<compile_context>
chip_gen: v7x
topology: tpu7x:2x2x1
jax: 0.10.0
libtpu: 0.0.40
codegen_flags: <defaults>
</compile_context>

<pallas_src>
import functools
import math

import jax
import jax.numpy as jnp
from jax.experimental import pallas as pl
from jax.experimental.pallas import tpu as pltpu


# --------------------------------------------------------------------------- #
# Backbone kernel: im2col patches -> matmul -> bias -> ReLU -> matmul -> bias #
# One (tm, K) row-tile of patches per grid step; weights/biases pinned.       #
# --------------------------------------------------------------------------- #
def _backbone_kernel(a_ref, w1_ref, b1_ref, w2_ref, b2_ref, o_ref):
    # a_ref: (tm, K), w1: (K, Ch), b1: (1, Ch), w2: (Ch, Cf), b2: (1, Cf)
    h = jnp.dot(a_ref[...], w1_ref[...], preferred_element_type=jnp.float32)
    h = jnp.maximum(h + b1_ref[...], 0.0)
    o = jnp.dot(h, w2_ref[...], preferred_element_type=jnp.float32) + b2_ref[...]
    o_ref[...] = o.astype(o_ref.dtype)


def _pick_tile_m(M, cap=256):
    """Row-tile for the backbone: multiple of 8, >=2 blocks when possible."""
    if M <= 8 or M % 8 != 0:
        return M                       # single full-extent block (always legal)
    return min(cap, max(8, (M // 2) // 8 * 8))


def backbone_forward(x, w1, b1, w2, b2, stride):
    """Patchify-conv backbone. x: (N, Cin, H, W) -> (N, Cf, H//s, W//s)."""
    N, Cin, H, W = x.shape
    Hf, Wf = H // stride, W // stride
    K = Cin * stride * stride
    Ch = w1.shape[1]
    Cf = w2.shape[1]
    M = N * Hf * Wf

    # im2col glue: non-overlapping stride x stride patches, NCHW -> (M, K)
    patches = x.reshape(N, Cin, Hf, stride, Wf, stride)
    patches = patches.transpose(0, 2, 4, 1, 3, 5).reshape(M, K)

    tm = _pick_tile_m(M)
    num_tiles = pl.cdiv(M, tm)
    M_pad = num_tiles * tm
    if M_pad != M:
        patches = jnp.pad(patches, ((0, M_pad - M), (0, 0)))

    out = pl.pallas_call(
        _backbone_kernel,
        out_shape=jax.ShapeDtypeStruct((M_pad, Cf), x.dtype),
        grid=(num_tiles,),
        in_specs=[
            pl.BlockSpec((tm, K), lambda i: (i, 0)),     # row-tile of patches
            pl.BlockSpec((K, Ch), lambda i: (0, 0)),     # weights pinned
            pl.BlockSpec((1, Ch), lambda i: (0, 0)),
            pl.BlockSpec((Ch, Cf), lambda i: (0, 0)),
            pl.BlockSpec((1, Cf), lambda i: (0, 0)),
        ],
        out_specs=pl.BlockSpec((tm, Cf), lambda i: (i, 0)),
        compiler_params=pltpu.CompilerParams(
            dimension_semantics=("parallel",)),
    )(patches, w1, b1, w2, b2)

    if M_pad != M:
        out = out[:M]

    # glue back to NCHW
    return out.reshape(N, Hf, Wf, Cf).transpose(0, 3, 1, 2)


# --------------------------------------------------------------------------- #
# DETR sine position-encoding kernel (one batch element per grid step)        #
# Vectorized over channels; lane-dense (Hf, Wf, 2P) output block.             #
# --------------------------------------------------------------------------- #
def _pos_enc_kernel(nm_ref, tril_ref, triu_ref, invdim_ref, o_ref, *, scale, eps):
    # nm_ref: (1, Hf, Wf) float32 not_mask; tril: (Hf, Hf); triu: (Wf, Wf)
    # invdim_ref: (1, 1, P) = 1/dim_t ; o_ref: (1, Hf, Wf, 2P)
    nm = nm_ref[0]                                                   # (Hf, Wf)
    Hf, Wf = nm.shape

    # cumsum along H / W as triangular matmuls (MXU)
    y_emb = jnp.dot(tril_ref[...], nm, preferred_element_type=jnp.float32)
    x_emb = jnp.dot(nm, triu_ref[...], preferred_element_type=jnp.float32)

    # normalize: divide by last row/col -> EUP reciprocal + multiply
    inv_y = pl.reciprocal(y_emb[Hf - 1:Hf, :] + eps, approx=True)    # (1, Wf)
    inv_x = pl.reciprocal(x_emb[:, Wf - 1:Wf] + eps, approx=True)    # (Hf, 1)
    y_emb = y_emb * inv_y * scale
    x_emb = x_emb * inv_x * scale

    inv_dim = invdim_ref[...]                                        # (1, 1, P)
    ang_y = y_emb[:, :, None] * inv_dim                              # (Hf, Wf, P)
    ang_x = x_emb[:, :, None] * inv_dim                              # (Hf, Wf, P)

    # even channels -> sin, odd channels -> cos (single vectorized pass)
    chan = jax.lax.broadcasted_iota(jnp.int32, ang_y.shape, 2)
    even = (chan % 2) == 0
    pos_y = jnp.where(even, jnp.sin(ang_y), jnp.cos(ang_y))
    pos_x = jnp.where(even, jnp.sin(ang_x), jnp.cos(ang_x))

    # channels last (lane axis): [pos_y | pos_x], single unmasked store
    o_ref[0] = jnp.concatenate([pos_y, pos_x], axis=-1).astype(o_ref.dtype)


def position_encoding_sine(feat_mask, num_pos_feats, temperature, out_dtype):
    """feat_mask: (N, Hf, Wf) bool (True = padded) -> (N, 2P, Hf, Wf)."""
    N, Hf, Wf = feat_mask.shape
    P = num_pos_feats
    not_mask = (~feat_mask).astype(jnp.float32)
    tril_h = jnp.tril(jnp.ones((Hf, Hf), jnp.float32))   # cumsum over H: tril @ nm
    triu_w = jnp.triu(jnp.ones((Wf, Wf), jnp.float32))   # cumsum over W: nm @ triu

    idx = jnp.arange(P, dtype=jnp.float32)
    inv_dim = (1.0 / temperature) ** (2.0 * jnp.floor(idx / 2.0) / P)
    inv_dim = inv_dim.reshape(1, 1, P)

    kernel = functools.partial(_pos_enc_kernel, scale=2.0 * math.pi, eps=1e-6)
    pos_nhwc = pl.pallas_call(
        kernel,
        out_shape=jax.ShapeDtypeStruct((N, Hf, Wf, 2 * P), out_dtype),
        grid=(N,),
        in_specs=[
            pl.BlockSpec((1, Hf, Wf), lambda n: (n, 0, 0)),
            pl.BlockSpec((Hf, Hf), lambda n: (0, 0)),
            pl.BlockSpec((Wf, Wf), lambda n: (0, 0)),
            pl.BlockSpec((1, 1, P), lambda n: (0, 0, 0)),
        ],
        out_specs=pl.BlockSpec((1, Hf, Wf, 2 * P), lambda n: (n, 0, 0, 0)),
        compiler_params=pltpu.CompilerParams(dimension_semantics=("parallel",)),
    )(not_mask, tril_h, triu_w, inv_dim)

    # cheap layout plumbing back to NCHW
    return pos_nhwc.transpose(0, 3, 1, 2)                # (N, 2P, Hf, Wf)


# --------------------------------------------------------------------------- #
# Full pipeline forward                                                        #
# --------------------------------------------------------------------------- #
def detr_tracking_backbone_pipeline(x, x_mask, w1, b1, w2, b2, stride,
                                    num_pos_feats, temperature):
    N, Cin, H, W = x.shape
    Hf, Wf = H // stride, W // stride

    # backbone
    x_feat = backbone_forward(x, w1, b1, w2, b2, stride)         # (N, Cf, Hf, Wf)

    # F.interpolate(mask, size=feat.shape[-2:]) with default 'nearest' mode is
    # static index selection -> pure-JAX glue.
    idx_h = (jnp.arange(Hf) * H) // Hf
    idx_w = (jnp.arange(Wf) * W) // Wf
    x_feature_mask = x_mask[:, idx_h][:, :, idx_w]               # (N, Hf, Wf) bool

    # output dtype cast happens inside the kernel
    x_feature_pos = position_encoding_sine(
        x_feature_mask, num_pos_feats, temperature, x_feat.dtype
    )                                                            # (N, 2P, Hf, Wf)

    return x_feat, x_feature_mask, x_feature_pos


# --------------------------------------------------------------------------- #
# Pure-JAX reference (mirrors the PyTorch semantics) for verification          #
# --------------------------------------------------------------------------- #
def reference_forward(x, x_mask, w1, b1, w2, b2, stride, num_pos_feats,
                      temperature):
    N, Cin, H, W = x.shape
    Hf, Wf = H // stride, W // stride
    Cf = w2.shape[1]
    P = num_pos_feats

    patches = x.reshape(N, Cin, Hf, stride, Wf, stride)
    patches = patches.transpose(0, 2, 4, 1, 3, 5).reshape(N * Hf * Wf, -1)
    h = jnp.maximum(patches @ w1 + b1, 0.0)
    feat = (h @ w2 + b2).reshape(N, Hf, Wf, Cf).transpose(0, 3, 1, 2)

    idx_h = (jnp.arange(Hf) * H) // Hf
    idx_w = (jnp.arange(Wf) * W) // Wf
    feat_mask = x_mask[:, idx_h][:, :, idx_w]

    not_mask = (~feat_mask).astype(jnp.float32)
    y_embed = jnp.cumsum(not_mask, axis=1)
    x_embed = jnp.cumsum(not_mask, axis=2)
    eps = 1e-6
    scale = 2.0 * math.pi
    y_embed = y_embed / (y_embed[:, -1:, :] + eps) * scale
    x_embed = x_embed / (x_embed[:, :, -1:] + eps) * scale

    i = jnp.arange(P)
    dim_t = temperature ** (2.0 * (i // 2).astype(jnp.float32) / P)
    pos_x = x_embed[:, :, :, None] / dim_t
    pos_y = y_embed[:, :, :, None] / dim_t
    pos_x = jnp.stack(
        [jnp.sin(pos_x[..., 0::2]), jnp.cos(pos_x[..., 1::2])], axis=4
    ).reshape(N, Hf, Wf, P)
    pos_y = jnp.stack(
        [jnp.sin(pos_y[..., 0::2]), jnp.cos(pos_y[..., 1::2])], axis=4
    ).reshape(N, Hf, Wf, P)
    pos = jnp.concatenate([pos_y, pos_x], axis=3).transpose(0, 3, 1, 2)
    return feat, feat_mask, pos.astype(feat.dtype)


# --------------------------------------------------------------------------- #
if __name__ == "__main__":
    key = jax.random.PRNGKey(0)
    N, Cin, H, W = 2, 4, 16, 16
    stride = 4
    Ch, Cf = 32, 32            # hidden / output channels of the synthetic backbone
    P = Cf // 2                # num_pos_feats -> pos has Cf channels
    temperature = 10000.0

    k1, k2, k3, k4, k5 = jax.random.split(key, 5)
    x = jax.random.normal(k1, (N, Cin, H, W), jnp.float32)

    # padding mask (True = padded), different padding per batch element
    col = jnp.arange(W)[None, None, :]
    row = jnp.arange(H)[None, :, None]
    batch = jnp.arange(N)[:, None, None]
    x_mask = (col >= (W - 3 - 2 * batch)) | (row >= (H - 2 - 3 * batch))
    x_mask = jnp.broadcast_to(x_mask, (N, H, W))

    # deterministic synthetic weights
    w1 = jax.random.normal(k2, (Cin * stride * stride, Ch), jnp.float32) * 0.05
    b1 = jax.random.normal(k3, (1, Ch), jnp.float32) * 0.05
    w2 = jax.random.normal(k4, (Ch, Cf), jnp.float32) * 0.05
    b2 = jax.random.normal(k5, (1, Cf), jnp.float32) * 0.05

    x_feat, x_feature_mask, x_feature_pos = detr_tracking_backbone_pipeline(
        x, x_mask, w1, b1, w2, b2, stride, P, temperature
    )
    jax.block_until_ready((x_feat, x_feature_mask, x_feature_pos))

    # verify against pure-JAX reference
    feat_r, mask_r, pos_r = reference_forward(
        x, x_mask, w1, b1, w2, b2, stride, P, temperature
    )
    Hf, Wf = H // stride, W // stride
    assert x_feat.shape == (N, Cf, Hf, Wf) and x_feat.dtype == jnp.float32
    assert x_feature_mask.shape == (N, Hf, Wf) and x_feature_mask.dtype == jnp.bool_
    assert x_feature_pos.shape == (N, Cf, Hf, Wf) and x_feature_pos.dtype == x_feat.dtype
    assert jnp.allclose(x_feat, feat_r, atol=1e-4, rtol=1e-4)
    assert jnp.array_equal(x_feature_mask, mask_r)
    # looser tol for pos: kernel intentionally uses pl.reciprocal(approx=True)
    assert jnp.allclose(x_feature_pos, pos_r, atol=5e-3, rtol=5e-3)

    print("KERNEL_OK")
</pallas_src>

<mosaic_0001>
module attributes {stable_mosaic.version = 11 : i64} {
  func.func @_backbone_kernel(%arg0: i32, %arg1: memref<16x64xf32, #tpu.memory_space<vmem>>, %arg2: memref<64x32xf32, #tpu.memory_space<vmem>>, %arg3: memref<1x32xf32, #tpu.memory_space<vmem>>, %arg4: memref<32x32xf32, #tpu.memory_space<vmem>>, %arg5: memref<1x32xf32, #tpu.memory_space<vmem>>, %arg6: memref<16x32xf32, #tpu.memory_space<vmem>>) attributes {dimension_semantics = [#tpu.dimension_semantics<parallel>], iteration_bounds = array<i64: 2>, scalar_prefetch = 0 : i64, scratch_operands = 0 : i64, tpu.core_type = #tpu.core_type<tc>, window_params = [{transform_indices = @transform_0, window_bounds = array<i64: 16, 64>}, {pipeline_mode = #tpu.pipeline_mode<synchronous>, transform_indices = @transform_1, window_bounds = array<i64: 64, 32>}, {pipeline_mode = #tpu.pipeline_mode<synchronous>, transform_indices = @transform_2, window_bounds = array<i64: 1, 32>}, {pipeline_mode = #tpu.pipeline_mode<synchronous>, transform_indices = @transform_3, window_bounds = array<i64: 32, 32>}, {pipeline_mode = #tpu.pipeline_mode<synchronous>, transform_indices = @transform_4, window_bounds = array<i64: 1, 32>}, {transform_indices = @transform_5, window_bounds = array<i64: 16, 32>}]} {
    %c0 = arith.constant 0 : index
    %c0_0 = arith.constant 0 : index
    %0 = vector.load %arg1[%c0, %c0_0] : memref<16x64xf32, #tpu.memory_space<vmem>>, vector<16x64xf32>
    %c0_1 = arith.constant 0 : index
    %c0_2 = arith.constant 0 : index
    %1 = vector.load %arg2[%c0_1, %c0_2] : memref<64x32xf32, #tpu.memory_space<vmem>>, vector<64x32xf32>
    %cst = arith.constant dense<0.000000e+00> : vector<16x32xf32>
    %2 = tpu.matmul %0, %1, %cst {dimension_numbers = #tpu.dot_dimension_numbers<[1], [0], [0], [1], [0, 0, 1, 1], [], []>} : vector<16x64xf32>, vector<64x32xf32>, vector<16x32xf32> -> vector<16x32xf32>
    %c0_3 = arith.constant 0 : index
    %c0_4 = arith.constant 0 : index
    %3 = vector.load %arg3[%c0_3, %c0_4] : memref<1x32xf32, #tpu.memory_space<vmem>>, vector<1x32xf32>
    %4 = vector.broadcast %3 : vector<1x32xf32> to vector<16x32xf32>
    %5 = arith.addf %2, %4 : vector<16x32xf32>
    %cst_5 = arith.constant 0.000000e+00 : f32
    %6 = vector.broadcast %cst_5 : f32 to vector<16x32xf32>
    %7 = arith.maximumf %5, %6 : vector<16x32xf32>
    %c0_6 = arith.constant 0 : index
    %c0_7 = arith.constant 0 : index
    %8 = vector.load %arg4[%c0_6, %c0_7] : memref<32x32xf32, #tpu.memory_space<vmem>>, vector<32x32xf32>
    %cst_8 = arith.constant dense<0.000000e+00> : vector<16x32xf32>
    %9 = tpu.matmul %7, %8, %cst_8 {dimension_numbers = #tpu.dot_dimension_numbers<[1], [0], [0], [1], [0, 0, 1, 1], [], []>} : vector<16x32xf32>, vector<32x32xf32>, vector<16x32xf32> -> vector<16x32xf32>
    %c0_9 = arith.constant 0 : index
    %c0_10 = arith.constant 0 : index
    %10 = vector.load %arg5[%c0_9, %c0_10] : memref<1x32xf32, #tpu.memory_space<vmem>>, vector<1x32xf32>
    %11 = vector.broadcast %10 : vector<1x32xf32> to vector<16x32xf32>
    %12 = arith.addf %9, %11 : vector<16x32xf32>
    %c0_11 = arith.constant 0 : index
    %c0_12 = arith.constant 0 : index
    %13 = vector.load %arg6[%c0_11, %c0_12] : memref<16x32xf32, #tpu.memory_space<vmem>>, vector<16x32xf32>
    tpu.vector_store %arg6[%c0_11, %c0_12], %12 {strides = array<i32>} : memref<16x32xf32, #tpu.memory_space<vmem>>, vector<16x32xf32>,
    return
  }
  func.func @transform_0(%arg0: i32) -> (i32, i32) {
    %c0_i32 = arith.constant 0 : i32
    %c0_i32_0 = arith.constant 0 : i32
    return %arg0, %c0_i32 : i32, i32
  }
  func.func @transform_1(%arg0: i32) -> (i32, i32) {
    %c0_i32 = arith.constant 0 : i32
    %c0_i32_0 = arith.constant 0 : i32
    %c0_i32_1 = arith.constant 0 : i32
    return %c0_i32, %c0_i32_0 : i32, i32
  }
  func.func @transform_2(%arg0: i32) -> (i32, i32) {
    %c0_i32 = arith.constant 0 : i32
    %c0_i32_0 = arith.constant 0 : i32
    %c0_i32_1 = arith.constant 0 : i32
    return %c0_i32, %c0_i32_0 : i32, i32
  }
  func.func @transform_3(%arg0: i32) -> (i32, i32) {
    %c0_i32 = arith.constant 0 : i32
    %c0_i32_0 = arith.constant 0 : i32
    %c0_i32_1 = arith.constant 0 : i32
    return %c0_i32, %c0_i32_0 : i32, i32
  }
  func.func @transform_4(%arg0: i32) -> (i32, i32) {
    %c0_i32 = arith.constant 0 : i32
    %c0_i32_0 = arith.constant 0 : i32
    %c0_i32_1 = arith.constant 0 : i32
    return %c0_i32, %c0_i32_0 : i32, i32
  }
  func.func @transform_5(%arg0: i32) -> (i32, i32) {
    %c0_i32 = arith.constant 0 : i32
    %c0_i32_0 = arith.constant 0 : i32
    return %arg0, %c0_i32 : i32, i32
  }
}

</mosaic_0001>

<bundles_post_ra>
// kernel: tpu_custom_call.1
= control target key start
LH: loop header
LB: loop body
LE: loop exit
PB: predicated region body
PF: predicated region fallthrough
CT: control target
= control target key end

     0   :  { %10 = vsyncpa [#allocation3], 0  ;;  %s873_s0 = inlined_call_operand.vmem [shape: f32[32,64], index: 0, kind: input, shape index: {}]   ;;  %s874_s1 = inlined_call_operand.vmem [shape: f32[64,32], index: 1, kind: input, shape index: {}]   ;;  %s875_s2 = inlined_call_operand.vmem [shape: f32[1,32], index: 2, kind: input, shape index: {}]   ;;  %s876_s3 = inlined_call_operand.vmem [shape: f32[32,32], index: 3, kind: input, shape index: {}]   ;;  %s877_s4 = inlined_call_operand.vmem [shape: f32[1,32], index: 4, kind: input, shape index: {}]   ;;  %s878_s5 = inlined_call_operand.hbm [shape: f32[32,32], index: 5, kind: output, shape index: {}]  }
   0x1   :  { %12 = vsyncpa [#allocation3 + $0x1], 0  ;;  %s725_s18 = smov 0   ;;  %s727_s19 = smov 0  }
   0x2   :  { %s729_s20 = smov 0   ;;  %s731_s21 = smov 0  }
   0x3 LB: > { %s746_s22 = sadd.s32 4294967295, %s690_s21   ;;  %s498_s23 = sadd.s32 4294967294, %s690_s21   ;;  %s690_s21 = sphi %s731_s21, %s884_s21   ;;  %s686_s20 = sphi %s729_s20, %s883_s20   ;;  %s682_s19 = sphi %s727_s19, %s882_s19   ;;  %s678_s18 = sphi %s725_s18, %s881_s18  }
   0x4   : > { %s750_s24 = sadd.s32 1, %s690_s21   ;;  %s135_s25 = sadd.s32 1, %s686_s20 }
   0x5   : > { %s132_s26 = ssub.s32 %s690_s21, %s750_s24  ;;  %p145_p0 = scmp.ne.s32.totalorder %s686_s20, %s682_s19 }
   0x6   : > { %p133_p1 = scmp.eq.s32.totalorder %s132_s26, 0  ;;  %p146_p2 = scmp.eq.s32.totalorder %s746_s22, 1 }
   0x7   : > { %p151_p3 = scmp.ne.s32.totalorder %s682_s19, %s678_s18  ;;  %p152_p4 = scmp.eq.s32.totalorder %s498_s23, 1 }
   0x8   : > { %s761_s27 = scalar_select %p133_p1, %s686_s20, %s135_s25  }
   0x9   : > { %p763_p5 = por %p146_p2, %p145_p0  ;;  %p767_p6 = por %p152_p4, %p151_p3 }
   0xa   : > { %p501_p7 = scmp.ge.s32.totalorder %s690_s21, 1  ;;  %p191_p8 = scmp.lt.s32.totalorder %s690_s21, 3 }
   0xc   : > { %p192_p9 = pnand %p501_p7, %p191_p8 }
   0xd   : > { %v228_v0 = vld [vmem:[%s874_s1] sm:$0xff] (!%p192_p9)  ;;  %v229_v1 = vld [vmem:[%s874_s1 + $0x8] sm:$0xff] (!%p192_p9)  ;;  %v230_v2 = vld [vmem:[%s874_s1 + $0x10] sm:$0xff] (!%p192_p9)  ;;  %s503_s11 = sshll.u32 (!%p192_p9), %s746_s22, 1  ;;  %vm243_vm0 = vcmask (!%p192_p9), 523264   ;;  %vm338_vm1 = vcmask (!%p192_p9), 261120  }
   0xe   : > { %195 = sbr.rel (%p192_p9) target bundleno = 480 (0x1e0), region = 40  ;;  %v563_v3 = vpack.c.bf16 (!%p192_p9), %v229_v1, %v228_v0  ;;  %v231_v4 = vld [vmem:[%s874_s1 + $0x18] sm:$0xff] (!%p192_p9)  ;;  %p220_p10 = scmp.lt.s32.totalorder (!%p192_p9), %s503_s11, 3  ;;  %v232_v6 = vld [vmem:[%s874_s1 + $0x20] sm:$0xff] (!%p192_p9)  ;;  %v233_v7 = vld [vmem:[%s874_s1 + $0x28] sm:$0xff] (!%p192_p9) }
   0xf   : > { %v567_v5 = vpack.c.bf16 (!%p192_p9), %v231_v4, %v230_v2  ;;  %v327_v8 = vld [vmem:[%s876_s3] sm:$0xff] (!%p192_p9)  ;;  %v328_v9 = vld [vmem:[%s876_s3 + $0x8] sm:$0xff] (!%p192_p9)  ;;  %v571_v11 = vpack.c.bf16 (!%p192_p9), %v233_v7, %v232_v6  ;;  %v234_v12 = vld [vmem:[%s874_s1 + $0x30] sm:$0xff] (!%p192_p9)  ;;  %s216_s26 = sand.u32 (!%p192_p9), 1, %s682_s19   ;;  %s516_s10 = sshll.u32 (!%p192_p9), %s746_s22, 8 }
  0x10   : > { %564 = vmatprep.subr.bf16.mxu0 (!%p192_p9), %v563_v3  ;;  %v579_v10 = vpack.c.bf16 (!%p192_p9), %v328_v9, %v327_v8  ;;  %v235_v13 = vld [vmem:[%s874_s1 + $0x38] sm:$0xff] (!%p192_p9)  ;;  %v329_v17 = vld [vmem:[%s876_s3 + $0x10] sm:$0xff] (!%p192_p9)  ;;  %v505_v20 = vld [vmem:[%s875_s2] ss:$0 sm:$0xff] (!%p192_p9)  ;;  %s502_s30 = sshll.u32 (!%p192_p9), %s216_s26, 4  ;;  %s692_s15 = smov (!%p192_p9), [#allocation2]  }
  0x11   : > { %566 = vmatpush3.bf16.msra.mxu0 (!%p192_p9), %v563_v3  ;;  %v575_v15 = vpack.c.bf16 (!%p192_p9), %v235_v13, %v234_v12  ;;  %v330_v18 = vld [vmem:[%s876_s3 + $0x18] sm:$0xff] (!%p192_p9)  ;;  %v508_v27 = vld [vmem:[%s877_s4] ss:$0 sm:$0xff] (!%p192_p9)  ;;  %s218_s8 = scalar_lea.vmem (!%p192_p9), [#allocation2], %s502_s30  ;;  %s632_s16 = sshll.u32 (!%p192_p9), %s692_s15, 4  ;;  %s633_s16 = int_to_ptr.vmem [resolvable:$false] %s632_s16 }
  0x12   : > { %568 = vmatprep.subr.bf16.mxu0 (!%p192_p9), %v567_v5  ;;  %580 = vmatprep.subr.bf16.mxu1 (!%p192_p9), %v579_v10  ;;  %v583_v19 = vpack.c.bf16 (!%p192_p9), %v330_v18, %v329_v17  ;;  %s436_s9 = sshll.u32 (!%p192_p9), %s218_s8, 4  ;;  %s634_s17 = scalar_lea.vmem (!%p192_p9), %s633_s16, 512  ;;  %s823_s9 = int_to_ptr.vmem [resolvable:$true] %s436_s9 }
  0x13   : > { %582 = vmatpush3.bf16.msra.mxu1 (!%p192_p9), %v579_v10  ;;  %s628_s22 = scalar_lea.vmem (!%p192_p9), %s823_s9, 256  ;;  %p635_p0 = scmp.lt.s32.totalorder (!%p192_p9), %s823_s9, %s633_s16 }
  0x14   : > { %584 = vmatprep.subr.bf16.mxu1 (!%p192_p9), %v583_v19  ;;  %p629_p11 = scmp.ne.s32.totalorder (!%p192_p9), %s823_s9, %s628_s22  ;;  %p636_p1 = scmp.lt.s32.totalorder (!%p192_p9), %s634_s17, %s628_s22 }
  0x15   : > { %s886_s11 = smov (!%p220_p10, %s503_s11), 3  ;;  %570 = vmatpush3.bf16.msra.mxu0 %v567_v5 }
  0x16   : > { %s504_s6 = sshll.u32 %s886_s11, 3  ;;  %572 = vmatprep.subr.bf16.mxu0 %v571_v11  ;;  %s832_s11 = scalar_lea.sflag [#allocation3], %s216_s26 }
  0x17   : > { %s223_s14 = scalar_lea.vmem %s873_s0, %s504_s6  ;;  %586 = vmatpush3.bf16.msra.mxu1 %v583_v19  ;;  %p630_p12 = pnand %p629_p11, %p763_p5 }
  0x18   : > { %v226_v14 = vld [vmem:[%s223_s14] sm:$0xff]  ;;  %v227_v16 = vld [vmem:[%s223_s14 + $0x8] sm:$0xff]  ;;  %s828_s14 = scalar_lea.hbm %s878_s5, %s516_s10  ;;  %p637_p2 = por %p636_p1, %p635_p0 }
  0x19   : > { %549 = vmatprep.mubr.msk.f32.mxu0 %vm243_vm0, %v226_v14  ;;  %574 = vmatpush3.bf16.msra.mxu0 %v571_v11  ;;  %p631_p13 = pneg %p630_p12 }
  0x1a   : > { %576 = vmatprep.subr.bf16.mxu0 %v575_v15 }
  0x1b   : > { %p638_p3 = pnand %p637_p2, %p631_p13 }
  0x1d   : > { %578 = vmatpush3.bf16.msra.mxu0 %v575_v15 }
  0x20   : > { %550 = vmatmul.mubr.msk.f32.vlgmr.msra.gmra.mrb[0].mxu0 %vm243_vm0, %v227_v16 }
  0xf3   : > { %v551_v21 = vpop.f32.mrb[0].mxu0 }
  0xf4   : > { %v322_v22 = vadd.f32 %v551_v21, %v505_v20  ;;  %v316_v23 = vpop.f32.mrb[1].mxu0 }
  0xf5   : > { %v317_v24 = vadd.f32 %v505_v20, %v316_v23 }
  0xf6   : > { %v326_v26 = vmax.f32 %v322_v22, 0.0 }
  0xf7   : > { %v325_v25 = vmax.f32 %v317_v24, 0.0 }
  0xf9   : > { %560 = vmatprep.mubr.msk.f32.mxu1 %vm338_vm1, %v325_v25 }
  0xfa   : > { %561 = vmatmul.mubr.msk.f32.vlgmr.msra.gmra.mrb[0].mxu1 %vm338_vm1, %v326_v26 }
 0x1cd   : > { %v562_v28 = vpop.f32.mrb[0].mxu1 }
 0x1ce   : > { %v417_v29 = vadd.f32 %v562_v28, %v508_v27  ;;  %v411_v30 = vpop.f32.mrb[1].mxu1 }
 0x1cf   : > { %v412_v31 = vadd.f32 %v508_v27, %v411_v30 }
 0x1d0   : > { %421 = vst.msk [vmem:[%s218_s8 + $0x8] sm:$0xff] %vm338_vm1, %v417_v29 }
 0x1d1   : > { %420 = vst.msk [vmem:[%s218_s8] sm:$0xff] %vm338_vm1, %v412_v31 }
 0x1d2   : > { %641 = shalt.err (!%p638_p3)
}
 0x1d3   : > { %s642_s23 = scalar_lea.hbm %s828_s14, 256  ;;  %s646_s30 = scalar_lea.hbm %s878_s5, 512 }
 0x1d4   : > { %p643_p4 = scmp.ne.s32.totalorder %s828_s14, %s642_s23  ;;  %p647_p9 = scmp.lt.u32.totalorder %s828_s14, %s878_s5 }
 0x1d5   : > { %p648_p10 = scmp.lt.u32.totalorder %s646_s30, %s642_s23  ;;  %p650_p12 = scmp.lt.u32.totalorder %s642_s23, %s828_s14 }
 0x1d6   : > { %p644_p7 = pnand %p643_p4, %p763_p5 }
 0x1d7   : > { %p649_p11 = por %p648_p10, %p647_p9 }
 0x1d8   : > { %p645_p8 = pneg %p644_p7 }
 0x1d9   : > { %p651_p13 = por %p650_p12, %p649_p11 }
 0x1db   : > { %p652_p0 = pnand %p651_p13, %p645_p8 }
 0x1dd   : > { %655 = shalt.err (!%p652_p0)
}
 0x1de   : > { %s693_s8 = smov 128   ;;  %s694_s10 = smov 8  }
 0x1df   : > { %587 = dma.vmem_to_hbm [thread:$0]  (%p763_p5), %s823_s9, 256, %s828_s14, %s832_s11, %s693_s8, %s693_s8, %s694_s10  }
 0x1e0 PF: > { %p593_p1 = scmp.ge.s32.totalorder %s690_s21, 2  ;;  %s451_s12 = sand.u32 1, %s678_s18  }
 0x1e1   : > { %s452_s13 = scalar_lea.sflag [#allocation3], %s451_s12 }
 0x1e2   : > { %p590_p2 = pnand %p593_p1, %p767_p6 }
 0x1e4   : > { %673 = dma.done.wait (!%p590_p2), %s452_s13, 256  }
 0x1e5   : > { %675 = vsyncadd (!%p590_p2), %s452_s13, 4294967040  ;;  %p15_p3 = scmp.ge.s32.totalorder %s750_s24, 4   ;;  %s881_s18 = smov %s682_s19 }
 0x1e6   : > { %s882_s19 = smov %s686_s20  ;;  %s883_s20 = smov %s761_s27 }
 0x1e7   : > { %s884_s21 = smov %s750_s24  ;;  %17 = sbr.rel (!%p15_p3) target bundleno = 3 (0x3), region = 75 }
 0x1ee   :  { %457 = vsyncpa [#allocation3], 1 }
 0x1ef   :  { %459 = vsyncpa [#allocation3 + $0x1], 1 }

</bundles_post_ra>
